<compile_context>
chip_gen: v6e
topology: v6e:2x2x1
jax: 0.10.0
libtpu: 0.0.40
codegen_flags: <defaults>
</compile_context>

<pallas_src>
import math

import jax
import jax.numpy as jnp
import numpy as np
from jax.experimental import pallas as pl
from jax.experimental.pallas import tpu as pltpu

LANE = 128  # TPU lane width; N tiles are kept lane-dense multiples of this.


def _round_up(v, m):
    return (v + m - 1) // m * m


# ---------------------------------------------------------------------------
# Pallas kernel: per (batch, n-tile) block
#   out[o, n] = sum_k dw[o, idx[k, n]] * sum_c w[o, c] * x[k, c, n]
# ---------------------------------------------------------------------------
def _pointconv_sm_kernel(w_ref, dw_ref, x_ref, idx_ref, o_ref):
    # w_ref   : (Cout, C3)   bf16   1x1 conv weight (same block for all tiles)
    # dw_ref  : (Cout, 27)   bf16   flattened 3x3x3 depthwise kernel
    # x_ref   : (K, C3, Nt)  bf16   gathered features ++ rel_xyz (K leading)
    # idx_ref : (K, 1, Nt)   int32  flat nearest-neighbour grid index in [0,26]
    # o_ref   : (Cout, Nt)   f32    output tile == f32 accumulator (VMEM)
    w = w_ref[...]
    dw = dw_ref[...]
    k_dim = x_ref.shape[0]
    nt = x_ref.shape[2]

    # Accumulate in VMEM (the output block itself) so only small per-k
    # temporaries live in vregs -> no spills at production tile sizes.
    o_ref[...] = jnp.zeros_like(o_ref)

    def body(kk, carry):
        # Leading-axis slice: free view, already (sublane=C3, lane=Nt).
        x_k = x_ref[kk]                                               # (C3, Nt)
        y = jnp.dot(w, x_k, preferred_element_type=jnp.float32)       # (Cout, Nt)

        # Fused grid_sample(nearest/border): one_hot(idx,27) @ dw on the MXU.
        # one-hot entries (0/1) are exact in bf16, so this reproduces the
        # bf16 depthwise weights exactly.
        idx_k = idx_ref[kk]                                           # (1, Nt)
        onehot = (jax.lax.broadcasted_iota(jnp.int32, (27, nt), 0)
                  == idx_k).astype(jnp.bfloat16)                      # (27, Nt)
        kern_k = jnp.dot(dw, onehot,
                         preferred_element_type=jnp.float32)          # (Cout, Nt)

        # f32 multiply-accumulate on the VPU (v5e has no bf16 VPU path).
        o_ref[...] += kern_k * y
        return carry

    jax.lax.fori_loop(0, k_dim, body, 0, unroll=True)


def _vmem_limit_bytes(cout, c3, k, nt):
    # Double-buffered x/idx/out blocks + weights + headroom, clamped to be
    # safe on v7x's 64 MiB physical VMEM and never below the 32 MiB default.
    dbuf = 2 * (k * c3 * nt * 2      # x block (bf16)
                + k * 1 * nt * 4     # idx block (int32)
                + cout * nt * 4)     # out block (f32)
    weights = (cout * c3 + cout * 27) * 2
    want = 2 * (dbuf + weights) + (8 << 20)
    return int(min(48 << 20, max(32 << 20, want)))


def pointconv_sm_pallas(w1x1, conv_dw, x, idx, *, n_tile=512):
    """w1x1: (Cout, C3) f32; conv_dw: (Cout,3,3,3) f32;
    x: (B, K, C3, N) f32; idx: (B, K, 1, N) int32  ->  (B, Cout, N) f32."""
    b, k, c3, n = x.shape
    cout = w1x1.shape[0]

    # Lane-dense N tiling (multiple of 128).  n_tile~512 fits v7x's 64 MiB
    # VMEM; on v5e/v6e (128 MiB) it can be raised to 2048+ via the kwarg.
    n_pad = _round_up(n, LANE)
    nt = min(_round_up(n_tile, LANE), n_pad)
    while n_pad % nt:
        nt -= LANE

    if n_pad != n:
        x = jnp.pad(x, ((0, 0), (0, 0), (0, 0), (0, n_pad - n)))
        idx = jnp.pad(idx, ((0, 0), (0, 0), (0, 0), (0, n_pad - n)))

    # bf16 weights/activations halve HBM traffic (the binding resource);
    # accumulation stays f32 inside the kernel.
    w_bf16 = w1x1.astype(jnp.bfloat16)
    dw_bf16 = conv_dw.reshape(cout, 27).astype(jnp.bfloat16)
    x_bf16 = x.astype(jnp.bfloat16)

    out = pl.pallas_call(
        _pointconv_sm_kernel,
        out_shape=jax.ShapeDtypeStruct((b, cout, n_pad), jnp.float32),
        grid=(b, n_pad // nt),
        in_specs=[
            pl.BlockSpec((cout, c3), lambda bi, ji: (0, 0)),
            pl.BlockSpec((cout, 27), lambda bi, ji: (0, 0)),
            pl.BlockSpec((None, k, c3, nt), lambda bi, ji: (bi, 0, 0, ji)),
            pl.BlockSpec((None, k, 1, nt), lambda bi, ji: (bi, 0, 0, ji)),
        ],
        out_specs=pl.BlockSpec((None, cout, nt), lambda bi, ji: (bi, 0, ji)),
        compiler_params=pltpu.CompilerParams(
            dimension_semantics=("parallel", "parallel"),
            vmem_limit_bytes=_vmem_limit_bytes(cout, c3, k, nt),
        ),
    )(w_bf16, dw_bf16, x_bf16, idx)
    return out[:, :, :n]


# ---------------------------------------------------------------------------
# Plain-JAX glue (data-dependent indexing; mirrors PyTorch semantics)
# ---------------------------------------------------------------------------
def nearest_flat_index(sample_xyz):
    """F.grid_sample(mode='nearest', padding_mode='border', align_corners=False)
    index math for a 3x3x3 volume.  (B,1,K,N,3) -> flat index (B,K,1,N) int32."""
    def to_index(g, size):
        i = ((g + 1.0) * size - 1.0) / 2.0      # align_corners=False unnormalize
        i = jnp.clip(i, 0.0, size - 1.0)        # padding_mode='border'
        return jnp.round(i).astype(jnp.int32)   # nearest (round half to even)

    ix = to_index(sample_xyz[..., 0], 3)  # x -> W (fastest)
    iy = to_index(sample_xyz[..., 1], 3)  # y -> H
    iz = to_index(sample_xyz[..., 2], 3)  # z -> D (slowest)
    flat = iz * 9 + iy * 3 + ix           # (B, 1, K, N)
    return jnp.transpose(flat, (0, 2, 1, 3))  # (B, K, 1, N)


def gather_neighbor_features(fea, knn_idx):
    """fea: (B, Cin, Npts), knn_idx: (B, n, k) -> (B, Cin, k, n) (PyTorch batch_gather)."""
    idx_t = jnp.transpose(knn_idx, (0, 2, 1))                      # (B, k, n)
    return jax.vmap(lambda f, i: jnp.take(f, i, axis=1))(fea, idx_t)


def pointconv_sm_forward(params, inputs, *, n_tile=512):
    """Full forward of PointConv_SM (n_neighbor > 1 branch)."""
    w1x1, conv_dw = params                     # (Cout, Cin+3), (Cout, 3, 3, 3)
    rel_xyz, sample_xyz, fea, knn_idx = inputs

    # TODO(synk): fuse this gather into the Pallas kernel (fea in pl.ANY +
    # scalar-prefetched knn_idx DMA gather) to avoid materializing x in HBM
    # when Cin >> 3.
    neighbor_fea = gather_neighbor_features(fea, knn_idx)     # (B, Cin, K, N)
    x = jnp.concatenate([neighbor_fea, rel_xyz], axis=1)      # (B, C3, K, N)
    x = jnp.transpose(x, (0, 2, 1, 3))                        # (B, K, C3, N): K leading

    idx = nearest_flat_index(sample_xyz)                      # (B, K, 1, N)
    return pointconv_sm_pallas(w1x1, conv_dw, x, idx, n_tile=n_tile)


def pointconv_sm_reference(params, inputs):
    """Pure-JAX reference applying the same bf16 rounding of weights/activations
    that the kernel uses before the MXU (accumulation in f32)."""
    w1x1, conv_dw = params
    rel_xyz, sample_xyz, fea, knn_idx = inputs
    cout = w1x1.shape[0]

    dw = conv_dw.astype(jnp.bfloat16).astype(jnp.float32).reshape(cout, 27)
    idx = nearest_flat_index(sample_xyz)[:, :, 0, :]          # (B, K, N)
    kern = jnp.transpose(dw[:, idx], (1, 0, 2, 3))            # (B, Cout, K, N)

    neighbor_fea = gather_neighbor_features(fea, knn_idx)     # (B, Cin, K, N)
    x = jnp.concatenate([neighbor_fea, rel_xyz], axis=1)      # (B, C3, K, N)
    xb = x.astype(jnp.bfloat16).astype(jnp.float32)
    wb = w1x1.astype(jnp.bfloat16).astype(jnp.float32)
    y = jnp.einsum("oc,bckn->bokn", wb, xb,
                   precision=jax.lax.Precision.HIGHEST)       # (B, Cout, K, N)
    return jnp.sum(kern * y, axis=2)                          # (B, Cout, N)


# ---------------------------------------------------------------------------
if __name__ == "__main__":
    B = 2            # batch
    CIN = 4          # in_channels
    COUT = 8         # out_channels
    K = 8            # n_neighbor
    N = 16           # number of sampled points (n)
    NPTS = 32        # number of source points in fea

    key = jax.random.PRNGKey(0)
    k1, k2, k3, k4, k5, k6 = jax.random.split(key, 6)

    # Parameters (deterministic init mimicking the module's __init__).
    fan_in = CIN + 3
    w_bound = 1.0 / math.sqrt(fan_in)                       # Conv1d default bound
    w1x1 = jax.random.uniform(k1, (COUT, CIN + 3), jnp.float32, -w_bound, w_bound)
    gain = math.sqrt(2.0)                                   # calculate_gain('relu', .)
    dw_bound = math.sqrt(3.0) * gain / math.sqrt(K)
    conv_dw = jax.random.uniform(k2, (COUT, 3, 3, 3), jnp.float32, -dw_bound, dw_bound)

    # Inputs.
    rel_xyz = jax.random.normal(k3, (B, 3, K, N), jnp.float32)
    sample_xyz = jax.random.uniform(k4, (B, 1, K, N, 3), jnp.float32, -1.2, 1.2)
    fea = jax.random.normal(k5, (B, CIN, NPTS), jnp.float32)
    knn_idx = jax.random.randint(k6, (B, N, K), 0, NPTS, jnp.int32)

    params = (w1x1, conv_dw)
    inputs = (rel_xyz, sample_xyz, fea, knn_idx)

    out = jax.block_until_ready(pointconv_sm_forward(params, inputs))
    ref = jax.block_until_ready(pointconv_sm_reference(params, inputs))
    np.testing.assert_allclose(np.asarray(out), np.asarray(ref), rtol=5e-4, atol=5e-4)

    print("KERNEL_OK")
</pallas_src>

<mosaic_0001>
module attributes {stable_mosaic.version = 11 : i64} {
  func.func @_pointconv_sm_kernel(%arg0: i32, %arg1: i32, %arg2: memref<8x7xbf16, #tpu.memory_space<vmem>>, %arg3: memref<8x27xbf16, #tpu.memory_space<vmem>>, %arg4: memref<1x8x7x128xbf16, #tpu.memory_space<vmem>>, %arg5: memref<1x8x1x128xi32, #tpu.memory_space<vmem>>, %arg6: memref<1x8x128xf32, #tpu.memory_space<vmem>>) attributes {dimension_semantics = [#tpu.dimension_semantics<parallel>, #tpu.dimension_semantics<parallel>], iteration_bounds = array<i64: 2, 1>, scalar_prefetch = 0 : i64, scratch_operands = 0 : i64, tpu.core_type = #tpu.core_type<tc>, window_params = [{pipeline_mode = #tpu.pipeline_mode<synchronous>, transform_indices = @transform_0, window_bounds = array<i64: 8, 7>}, {pipeline_mode = #tpu.pipeline_mode<synchronous>, transform_indices = @transform_1, window_bounds = array<i64: 8, 27>}, {transform_indices = @transform_2, window_bounds = array<i64: 1, 8, 7, 128>}, {transform_indices = @transform_3, window_bounds = array<i64: 1, 8, 1, 128>}, {transform_indices = @transform_4, window_bounds = array<i64: 1, 8, 128>}]} {
    %c0 = arith.constant 0 : index
    %c0_0 = arith.constant 0 : index
    %0 = vector.load %arg2[%c0, %c0_0] : memref<8x7xbf16, #tpu.memory_space<vmem>>, vector<8x7xbf16>
    %c0_1 = arith.constant 0 : index
    %c0_2 = arith.constant 0 : index
    %1 = vector.load %arg3[%c0_1, %c0_2] : memref<8x27xbf16, #tpu.memory_space<vmem>>, vector<8x27xbf16>
    %cst = arith.constant 0.000000e+00 : f32
    %2 = vector.broadcast %cst : f32 to vector<8x128xf32>
    %c0_3 = arith.constant 0 : index
    %c0_4 = arith.constant 0 : index
    %c0_5 = arith.constant 0 : index
    %3 = vector.load %arg6[%c0_3, %c0_4, %c0_5] : memref<1x8x128xf32, #tpu.memory_space<vmem>>, vector<1x8x128xf32>
    %4 = vector.shape_cast %3 : vector<1x8x128xf32> to vector<8x128xf32>
    %5 = vector.shape_cast %2 : vector<8x128xf32> to vector<1x8x128xf32>
    tpu.vector_store %arg6[%c0_3, %c0_4, %c0_5], %5 {strides = array<i32>} : memref<1x8x128xf32, #tpu.memory_space<vmem>>, vector<1x8x128xf32>,
    %c0_i32 = arith.constant 0 : i32
    %c0_6 = arith.constant 0 : index
    %6 = arith.index_cast %c0_i32 : i32 to index
    %c0_7 = arith.constant 0 : index
    %c0_8 = arith.constant 0 : index
    %7 = vector.load %arg4[%c0_6, %6, %c0_7, %c0_8] : memref<1x8x7x128xbf16, #tpu.memory_space<vmem>>, vector<1x1x7x128xbf16>
    %8 = vector.shape_cast %7 : vector<1x1x7x128xbf16> to vector<7x128xbf16>
    %cst_9 = arith.constant dense<0.000000e+00> : vector<8x128xf32>
    %9 = tpu.matmul %0, %8, %cst_9 {dimension_numbers = #tpu.dot_dimension_numbers<[1], [0], [0], [1], [0, 0, 1, 1], [], []>} : vector<8x7xbf16>, vector<7x128xbf16>, vector<8x128xf32> -> vector<8x128xf32>
    %c0_10 = arith.constant 0 : index
    %10 = arith.index_cast %c0_i32 : i32 to index
    %c0_11 = arith.constant 0 : index
    %c0_12 = arith.constant 0 : index
    %11 = vector.load %arg5[%c0_10, %10, %c0_11, %c0_12] : memref<1x8x1x128xi32, #tpu.memory_space<vmem>>, vector<1x1x1x128xi32>
    %12 = vector.shape_cast %11 : vector<1x1x1x128xi32> to vector<1x128xi32>
    %13 = tpu.iota {dimensions = array<i32: 0>} : vector<27x128xi32>
    %14 = vector.broadcast %12 : vector<1x128xi32> to vector<27x128xi32>
    %15 = arith.cmpi eq, %13, %14 : vector<27x128xi32>
    %16 = arith.extui %15 : vector<27x128xi1> to vector<27x128xi32>
    %17 = arith.sitofp %16 : vector<27x128xi32> to vector<27x128xf32>
    %18 = arith.truncf %17 : vector<27x128xf32> to vector<27x128xbf16>
    %cst_13 = arith.constant dense<0.000000e+00> : vector<8x128xf32>
    %19 = tpu.matmul %1, %18, %cst_13 {dimension_numbers = #tpu.dot_dimension_numbers<[1], [0], [0], [1], [0, 0, 1, 1], [], []>} : vector<8x27xbf16>, vector<27x128xbf16>, vector<8x128xf32> -> vector<8x128xf32>
    %c0_14 = arith.constant 0 : index
    %c0_15 = arith.constant 0 : index
    %c0_16 = arith.constant 0 : index
    %20 = vector.load %arg6[%c0_14, %c0_15, %c0_16] : memref<1x8x128xf32, #tpu.memory_space<vmem>>, vector<1x8x128xf32>
    %21 = vector.shape_cast %20 : vector<1x8x128xf32> to vector<8x128xf32>
    %22 = arith.mulf %19, %9 : vector<8x128xf32>
    %23 = arith.addf %21, %22 : vector<8x128xf32>
    %c0_17 = arith.constant 0 : index
    %c0_18 = arith.constant 0 : index
    %c0_19 = arith.constant 0 : index
    %24 = vector.load %arg6[%c0_17, %c0_18, %c0_19] : memref<1x8x128xf32, #tpu.memory_space<vmem>>, vector<1x8x128xf32>
    %25 = vector.shape_cast %24 : vector<1x8x128xf32> to vector<8x128xf32>
    %26 = vector.shape_cast %23 : vector<8x128xf32> to vector<1x8x128xf32>
    tpu.vector_store %arg6[%c0_17, %c0_18, %c0_19], %26 {strides = array<i32>} : memref<1x8x128xf32, #tpu.memory_space<vmem>>, vector<1x8x128xf32>,
    %c1_i32 = arith.constant 1 : i32
    %c0_20 = arith.constant 0 : index
    %27 = arith.index_cast %c1_i32 : i32 to index
    %c0_21 = arith.constant 0 : index
    %c0_22 = arith.constant 0 : index
    %28 = vector.load %arg4[%c0_20, %27, %c0_21, %c0_22] : memref<1x8x7x128xbf16, #tpu.memory_space<vmem>>, vector<1x1x7x128xbf16>
    %29 = vector.shape_cast %28 : vector<1x1x7x128xbf16> to vector<7x128xbf16>
    %cst_23 = arith.constant dense<0.000000e+00> : vector<8x128xf32>
    %30 = tpu.matmul %0, %29, %cst_23 {dimension_numbers = #tpu.dot_dimension_numbers<[1], [0], [0], [1], [0, 0, 1, 1], [], []>} : vector<8x7xbf16>, vector<7x128xbf16>, vector<8x128xf32> -> vector<8x128xf32>
    %c0_24 = arith.constant 0 : index
    %31 = arith.index_cast %c1_i32 : i32 to index
    %c0_25 = arith.constant 0 : index
    %c0_26 = arith.constant 0 : index
    %32 = vector.load %arg5[%c0_24, %31, %c0_25, %c0_26] : memref<1x8x1x128xi32, #tpu.memory_space<vmem>>, vector<1x1x1x128xi32>
    %33 = vector.shape_cast %32 : vector<1x1x1x128xi32> to vector<1x128xi32>
    %34 = tpu.iota {dimensions = array<i32: 0>} : vector<27x128xi32>
    %35 = vector.broadcast %33 : vector<1x128xi32> to vector<27x128xi32>
    %36 = arith.cmpi eq, %34, %35 : vector<27x128xi32>
    %37 = arith.extui %36 : vector<27x128xi1> to vector<27x128xi32>
    %38 = arith.sitofp %37 : vector<27x128xi32> to vector<27x128xf32>
    %39 = arith.truncf %38 : vector<27x128xf32> to vector<27x128xbf16>
    %cst_27 = arith.constant dense<0.000000e+00> : vector<8x128xf32>
    %40 = tpu.matmul %1, %39, %cst_27 {dimension_numbers = #tpu.dot_dimension_numbers<[1], [0], [0], [1], [0, 0, 1, 1], [], []>} : vector<8x27xbf16>, vector<27x128xbf16>, vector<8x128xf32> -> vector<8x128xf32>
    %c0_28 = arith.constant 0 : index
    %c0_29 = arith.constant 0 : index
    %c0_30 = arith.constant 0 : index
    %41 = vector.load %arg6[%c0_28, %c0_29, %c0_30] : memref<1x8x128xf32, #tpu.memory_space<vmem>>, vector<1x8x128xf32>
    %42 = vector.shape_cast %41 : vector<1x8x128xf32> to vector<8x128xf32>
    %43 = arith.mulf %40, %30 : vector<8x128xf32>
    %44 = arith.addf %42, %43 : vector<8x128xf32>
    %c0_31 = arith.constant 0 : index
    %c0_32 = arith.constant 0 : index
    %c0_33 = arith.constant 0 : index
    %45 = vector.load %arg6[%c0_31, %c0_32, %c0_33] : memref<1x8x128xf32, #tpu.memory_space<vmem>>, vector<1x8x128xf32>
    %46 = vector.shape_cast %45 : vector<1x8x128xf32> to vector<8x128xf32>
    %47 = vector.shape_cast %44 : vector<8x128xf32> to vector<1x8x128xf32>
    tpu.vector_store %arg6[%c0_31, %c0_32, %c0_33], %47 {strides = array<i32>} : memref<1x8x128xf32, #tpu.memory_space<vmem>>, vector<1x8x128xf32>,
    %c2_i32 = arith.constant 2 : i32
    %c0_34 = arith.constant 0 : index
    %48 = arith.index_cast %c2_i32 : i32 to index
    %c0_35 = arith.constant 0 : index
    %c0_36 = arith.constant 0 : index
    %49 = vector.load %arg4[%c0_34, %48, %c0_35, %c0_36] : memref<1x8x7x128xbf16, #tpu.memory_space<vmem>>, vector<1x1x7x128xbf16>
    %50 = vector.shape_cast %49 : vector<1x1x7x128xbf16> to vector<7x128xbf16>
    %cst_37 = arith.constant dense<0.000000e+00> : vector<8x128xf32>
    %51 = tpu.matmul %0, %50, %cst_37 {dimension_numbers = #tpu.dot_dimension_numbers<[1], [0], [0], [1], [0, 0, 1, 1], [], []>} : vector<8x7xbf16>, vector<7x128xbf16>, vector<8x128xf32> -> vector<8x128xf32>
    %c0_38 = arith.constant 0 : index
    %52 = arith.index_cast %c2_i32 : i32 to index
    %c0_39 = arith.constant 0 : index
    %c0_40 = arith.constant 0 : index
    %53 = vector.load %arg5[%c0_38, %52, %c0_39, %c0_40] : memref<1x8x1x128xi32, #tpu.memory_space<vmem>>, vector<1x1x1x128xi32>
    %54 = vector.shape_cast %53 : vector<1x1x1x128xi32> to vector<1x128xi32>
    %55 = tpu.iota {dimensions = array<i32: 0>} : vector<27x128xi32>
    %56 = vector.broadcast %54 : vector<1x128xi32> to vector<27x128xi32>
    %57 = arith.cmpi eq, %55, %56 : vector<27x128xi32>
    %58 = arith.extui %57 : vector<27x128xi1> to vector<27x128xi32>
    %59 = arith.sitofp %58 : vector<27x128xi32> to vector<27x128xf32>
    %60 = arith.truncf %59 : vector<27x128xf32> to vector<27x128xbf16>
    %cst_41 = arith.constant dense<0.000000e+00> : vector<8x128xf32>
    %61 = tpu.matmul %1, %60, %cst_41 {dimension_numbers = #tpu.dot_dimension_numbers<[1], [0], [0], [1], [0, 0, 1, 1], [], []>} : vector<8x27xbf16>, vector<27x128xbf16>, vector<8x128xf32> -> vector<8x128xf32>
    %c0_42 = arith.constant 0 : index
    %c0_43 = arith.constant 0 : index
    %c0_44 = arith.constant 0 : index
    %62 = vector.load %arg6[%c0_42, %c0_43, %c0_44] : memref<1x8x128xf32, #tpu.memory_space<vmem>>, vector<1x8x128xf32>
    %63 = vector.shape_cast %62 : vector<1x8x128xf32> to vector<8x128xf32>
    %64 = arith.mulf %61, %51 : vector<8x128xf32>
    %65 = arith.addf %63, %64 : vector<8x128xf32>
    %c0_45 = arith.constant 0 : index
    %c0_46 = arith.constant 0 : index
    %c0_47 = arith.constant 0 : index
    %66 = vector.load %arg6[%c0_45, %c0_46, %c0_47] : memref<1x8x128xf32, #tpu.memory_space<vmem>>, vector<1x8x128xf32>
    %67 = vector.shape_cast %66 : vector<1x8x128xf32> to vector<8x128xf32>
    %68 = vector.shape_cast %65 : vector<8x128xf32> to vector<1x8x128xf32>
    tpu.vector_store %arg6[%c0_45, %c0_46, %c0_47], %68 {strides = array<i32>} : memref<1x8x128xf32, #tpu.memory_space<vmem>>, vector<1x8x128xf32>,
    %c3_i32 = arith.constant 3 : i32
    %c0_48 = arith.constant 0 : index
    %69 = arith.index_cast %c3_i32 : i32 to index
    %c0_49 = arith.constant 0 : index
    %c0_50 = arith.constant 0 : index
    %70 = vector.load %arg4[%c0_48, %69, %c0_49, %c0_50] : memref<1x8x7x128xbf16, #tpu.memory_space<vmem>>, vector<1x1x7x128xbf16>
    %71 = vector.shape_cast %70 : vector<1x1x7x128xbf16> to vector<7x128xbf16>
    %cst_51 = arith.constant dense<0.000000e+00> : vector<8x128xf32>
    %72 = tpu.matmul %0, %71, %cst_51 {dimension_numbers = #tpu.dot_dimension_numbers<[1], [0], [0], [1], [0, 0, 1, 1], [], []>} : vector<8x7xbf16>, vector<7x128xbf16>, vector<8x128xf32> -> vector<8x128xf32>
    %c0_52 = arith.constant 0 : index
    %73 = arith.index_cast %c3_i32 : i32 to index
    %c0_53 = arith.constant 0 : index
    %c0_54 = arith.constant 0 : index
    %74 = vector.load %arg5[%c0_52, %73, %c0_53, %c0_54] : memref<1x8x1x128xi32, #tpu.memory_space<vmem>>, vector<1x1x1x128xi32>
    %75 = vector.shape_cast %74 : vector<1x1x1x128xi32> to vector<1x128xi32>
    %76 = tpu.iota {dimensions = array<i32: 0>} : vector<27x128xi32>
    %77 = vector.broadcast %75 : vector<1x128xi32> to vector<27x128xi32>
    %78 = arith.cmpi eq, %76, %77 : vector<27x128xi32>
    %79 = arith.extui %78 : vector<27x128xi1> to vector<27x128xi32>
    %80 = arith.sitofp %79 : vector<27x128xi32> to vector<27x128xf32>
    %81 = arith.truncf %80 : vector<27x128xf32> to vector<27x128xbf16>
    %cst_55 = arith.constant dense<0.000000e+00> : vector<8x128xf32>
    %82 = tpu.matmul %1, %81, %cst_55 {dimension_numbers = #tpu.dot_dimension_numbers<[1], [0], [0], [1], [0, 0, 1, 1], [], []>} : vector<8x27xbf16>, vector<27x128xbf16>, vector<8x128xf32> -> vector<8x128xf32>
    %c0_56 = arith.constant 0 : index
    %c0_57 = arith.constant 0 : index
    %c0_58 = arith.constant 0 : index
    %83 = vector.load %arg6[%c0_56, %c0_57, %c0_58] : memref<1x8x128xf32, #tpu.memory_space<vmem>>, vector<1x8x128xf32>
    %84 = vector.shape_cast %83 : vector<1x8x128xf32> to vector<8x128xf32>
    %85 = arith.mulf %82, %72 : vector<8x128xf32>
    %86 = arith.addf %84, %85 : vector<8x128xf32>
    %c0_59 = arith.constant 0 : index
    %c0_60 = arith.constant 0 : index
    %c0_61 = arith.constant 0 : index
    %87 = vector.load %arg6[%c0_59, %c0_60, %c0_61] : memref<1x8x128xf32, #tpu.memory_space<vmem>>, vector<1x8x128xf32>
    %88 = vector.shape_cast %87 : vector<1x8x128xf32> to vector<8x128xf32>
    %89 = vector.shape_cast %86 : vector<8x128xf32> to vector<1x8x128xf32>
    tpu.vector_store %arg6[%c0_59, %c0_60, %c0_61], %89 {strides = array<i32>} : memref<1x8x128xf32, #tpu.memory_space<vmem>>, vector<1x8x128xf32>,
    %c4_i32 = arith.constant 4 : i32
    %c0_62 = arith.constant 0 : index
    %90 = arith.index_cast %c4_i32 : i32 to index
    %c0_63 = arith.constant 0 : index
    %c0_64 = arith.constant 0 : index
    %91 = vector.load %arg4[%c0_62, %90, %c0_63, %c0_64] : memref<1x8x7x128xbf16, #tpu.memory_space<vmem>>, vector<1x1x7x128xbf16>
    %92 = vector.shape_cast %91 : vector<1x1x7x128xbf16> to vector<7x128xbf16>
    %cst_65 = arith.constant dense<0.000000e+00> : vector<8x128xf32>
    %93 = tpu.matmul %0, %92, %cst_65 {dimension_numbers = #tpu.dot_dimension_numbers<[1], [0], [0], [1], [0, 0, 1, 1], [], []>} : vector<8x7xbf16>, vector<7x128xbf16>, vector<8x128xf32> -> vector<8x128xf32>
    %c0_66 = arith.constant 0 : index
    %94 = arith.index_cast %c4_i32 : i32 to index
    %c0_67 = arith.constant 0 : index
    %c0_68 = arith.constant 0 : index
    %95 = vector.load %arg5[%c0_66, %94, %c0_67, %c0_68] : memref<1x8x1x128xi32, #tpu.memory_space<vmem>>, vector<1x1x1x128xi32>
    %96 = vector.shape_cast %95 : vector<1x1x1x128xi32> to vector<1x128xi32>
    %97 = tpu.iota {dimensions = array<i32: 0>} : vector<27x128xi32>
    %98 = vector.broadcast %96 : vector<1x128xi32> to vector<27x128xi32>
    %99 = arith.cmpi eq, %97, %98 : vector<27x128xi32>
    %100 = arith.extui %99 : vector<27x128xi1> to vector<27x128xi32>
    %101 = arith.sitofp %100 : vector<27x128xi32> to vector<27x128xf32>
    %102 = arith.truncf %101 : vector<27x128xf32> to vector<27x128xbf16>
    %cst_69 = arith.constant dense<0.000000e+00> : vector<8x128xf32>
    %103 = tpu.matmul %1, %102, %cst_69 {dimension_numbers = #tpu.dot_dimension_numbers<[1], [0], [0], [1], [0, 0, 1, 1], [], []>} : vector<8x27xbf16>, vector<27x128xbf16>, vector<8x128xf32> -> vector<8x128xf32>
    %c0_70 = arith.constant 0 : index
    %c0_71 = arith.constant 0 : index
    %c0_72 = arith.constant 0 : index
    %104 = vector.load %arg6[%c0_70, %c0_71, %c0_72] : memref<1x8x128xf32, #tpu.memory_space<vmem>>, vector<1x8x128xf32>
    %105 = vector.shape_cast %104 : vector<1x8x128xf32> to vector<8x128xf32>
    %106 = arith.mulf %103, %93 : vector<8x128xf32>
    %107 = arith.addf %105, %106 : vector<8x128xf32>
    %c0_73 = arith.constant 0 : index
    %c0_74 = arith.constant 0 : index
    %c0_75 = arith.constant 0 : index
    %108 = vector.load %arg6[%c0_73, %c0_74, %c0_75] : memref<1x8x128xf32, #tpu.memory_space<vmem>>, vector<1x8x128xf32>
    %109 = vector.shape_cast %108 : vector<1x8x128xf32> to vector<8x128xf32>
    %110 = vector.shape_cast %107 : vector<8x128xf32> to vector<1x8x128xf32>
    tpu.vector_store %arg6[%c0_73, %c0_74, %c0_75], %110 {strides = array<i32>} : memref<1x8x128xf32, #tpu.memory_space<vmem>>, vector<1x8x128xf32>,
    %c5_i32 = arith.constant 5 : i32
    %c0_76 = arith.constant 0 : index
    %111 = arith.index_cast %c5_i32 : i32 to index
    %c0_77 = arith.constant 0 : index
    %c0_78 = arith.constant 0 : index
    %112 = vector.load %arg4[%c0_76, %111, %c0_77, %c0_78] : memref<1x8x7x128xbf16, #tpu.memory_space<vmem>>, vector<1x1x7x128xbf16>
    %113 = vector.shape_cast %112 : vector<1x1x7x128xbf16> to vector<7x128xbf16>
    %cst_79 = arith.constant dense<0.000000e+00> : vector<8x128xf32>
    %114 = tpu.matmul %0, %113, %cst_79 {dimension_numbers = #tpu.dot_dimension_numbers<[1], [0], [0], [1], [0, 0, 1, 1], [], []>} : vector<8x7xbf16>, vector<7x128xbf16>, vector<8x128xf32> -> vector<8x128xf32>
    %c0_80 = arith.constant 0 : index
    %115 = arith.index_cast %c5_i32 : i32 to index
    %c0_81 = arith.constant 0 : index
    %c0_82 = arith.constant 0 : index
    %116 = vector.load %arg5[%c0_80, %115, %c0_81, %c0_82] : memref<1x8x1x128xi32, #tpu.memory_space<vmem>>, vector<1x1x1x128xi32>
    %117 = vector.shape_cast %116 : vector<1x1x1x128xi32> to vector<1x128xi32>
    %118 = tpu.iota {dimensions = array<i32: 0>} : vector<27x128xi32>
    %119 = vector.broadcast %117 : vector<1x128xi32> to vector<27x128xi32>
    %120 = arith.cmpi eq, %118, %119 : vector<27x128xi32>
    %121 = arith.extui %120 : vector<27x128xi1> to vector<27x128xi32>
    %122 = arith.sitofp %121 : vector<27x128xi32> to vector<27x128xf32>
    %123 = arith.truncf %122 : vector<27x128xf32> to vector<27x128xbf16>
    %cst_83 = arith.constant dense<0.000000e+00> : vector<8x128xf32>
    %124 = tpu.matmul %1, %123, %cst_83 {dimension_numbers = #tpu.dot_dimension_numbers<[1], [0], [0], [1], [0, 0, 1, 1], [], []>} : vector<8x27xbf16>, vector<27x128xbf16>, vector<8x128xf32> -> vector<8x128xf32>
    %c0_84 = arith.constant 0 : index
    %c0_85 = arith.constant 0 : index
    %c0_86 = arith.constant 0 : index
    %125 = vector.load %arg6[%c0_84, %c0_85, %c0_86] : memref<1x8x128xf32, #tpu.memory_space<vmem>>, vector<1x8x128xf32>
    %126 = vector.shape_cast %125 : vector<1x8x128xf32> to vector<8x128xf32>
    %127 = arith.mulf %124, %114 : vector<8x128xf32>
    %128 = arith.addf %126, %127 : vector<8x128xf32>
    %c0_87 = arith.constant 0 : index
    %c0_88 = arith.constant 0 : index
    %c0_89 = arith.constant 0 : index
    %129 = vector.load %arg6[%c0_87, %c0_88, %c0_89] : memref<1x8x128xf32, #tpu.memory_space<vmem>>, vector<1x8x128xf32>
    %130 = vector.shape_cast %129 : vector<1x8x128xf32> to vector<8x128xf32>
    %131 = vector.shape_cast %128 : vector<8x128xf32> to vector<1x8x128xf32>
    tpu.vector_store %arg6[%c0_87, %c0_88, %c0_89], %131 {strides = array<i32>} : memref<1x8x128xf32, #tpu.memory_space<vmem>>, vector<1x8x128xf32>,
    %c6_i32 = arith.constant 6 : i32
    %c0_90 = arith.constant 0 : index
    %132 = arith.index_cast %c6_i32 : i32 to index
    %c0_91 = arith.constant 0 : index
    %c0_92 = arith.constant 0 : index
    %133 = vector.load %arg4[%c0_90, %132, %c0_91, %c0_92] : memref<1x8x7x128xbf16, #tpu.memory_space<vmem>>, vector<1x1x7x128xbf16>
    %134 = vector.shape_cast %133 : vector<1x1x7x128xbf16> to vector<7x128xbf16>
    %cst_93 = arith.constant dense<0.000000e+00> : vector<8x128xf32>
    %135 = tpu.matmul %0, %134, %cst_93 {dimension_numbers = #tpu.dot_dimension_numbers<[1], [0], [0], [1], [0, 0, 1, 1], [], []>} : vector<8x7xbf16>, vector<7x128xbf16>, vector<8x128xf32> -> vector<8x128xf32>
    %c0_94 = arith.constant 0 : index
    %136 = arith.index_cast %c6_i32 : i32 to index
    %c0_95 = arith.constant 0 : index
    %c0_96 = arith.constant 0 : index
    %137 = vector.load %arg5[%c0_94, %136, %c0_95, %c0_96] : memref<1x8x1x128xi32, #tpu.memory_space<vmem>>, vector<1x1x1x128xi32>
    %138 = vector.shape_cast %137 : vector<1x1x1x128xi32> to vector<1x128xi32>
    %139 = tpu.iota {dimensions = array<i32: 0>} : vector<27x128xi32>
    %140 = vector.broadcast %138 : vector<1x128xi32> to vector<27x128xi32>
    %141 = arith.cmpi eq, %139, %140 : vector<27x128xi32>
    %142 = arith.extui %141 : vector<27x128xi1> to vector<27x128xi32>
    %143 = arith.sitofp %142 : vector<27x128xi32> to vector<27x128xf32>
    %144 = arith.truncf %143 : vector<27x128xf32> to vector<27x128xbf16>
    %cst_97 = arith.constant dense<0.000000e+00> : vector<8x128xf32>
    %145 = tpu.matmul %1, %144, %cst_97 {dimension_numbers = #tpu.dot_dimension_numbers<[1], [0], [0], [1], [0, 0, 1, 1], [], []>} : vector<8x27xbf16>, vector<27x128xbf16>, vector<8x128xf32> -> vector<8x128xf32>
    %c0_98 = arith.constant 0 : index
    %c0_99 = arith.constant 0 : index
    %c0_100 = arith.constant 0 : index
    %146 = vector.load %arg6[%c0_98, %c0_99, %c0_100] : memref<1x8x128xf32, #tpu.memory_space<vmem>>, vector<1x8x128xf32>
    %147 = vector.shape_cast %146 : vector<1x8x128xf32> to vector<8x128xf32>
    %148 = arith.mulf %145, %135 : vector<8x128xf32>
    %149 = arith.addf %147, %148 : vector<8x128xf32>
    %c0_101 = arith.constant 0 : index
    %c0_102 = arith.constant 0 : index
    %c0_103 = arith.constant 0 : index
    %150 = vector.load %arg6[%c0_101, %c0_102, %c0_103] : memref<1x8x128xf32, #tpu.memory_space<vmem>>, vector<1x8x128xf32>
    %151 = vector.shape_cast %150 : vector<1x8x128xf32> to vector<8x128xf32>
    %152 = vector.shape_cast %149 : vector<8x128xf32> to vector<1x8x128xf32>
    tpu.vector_store %arg6[%c0_101, %c0_102, %c0_103], %152 {strides = array<i32>} : memref<1x8x128xf32, #tpu.memory_space<vmem>>, vector<1x8x128xf32>,
    %c7_i32 = arith.constant 7 : i32
    %c0_104 = arith.constant 0 : index
    %153 = arith.index_cast %c7_i32 : i32 to index
    %c0_105 = arith.constant 0 : index
    %c0_106 = arith.constant 0 : index
    %154 = vector.load %arg4[%c0_104, %153, %c0_105, %c0_106] : memref<1x8x7x128xbf16, #tpu.memory_space<vmem>>, vector<1x1x7x128xbf16>
    %155 = vector.shape_cast %154 : vector<1x1x7x128xbf16> to vector<7x128xbf16>
    %cst_107 = arith.constant dense<0.000000e+00> : vector<8x128xf32>
    %156 = tpu.matmul %0, %155, %cst_107 {dimension_numbers = #tpu.dot_dimension_numbers<[1], [0], [0], [1], [0, 0, 1, 1], [], []>} : vector<8x7xbf16>, vector<7x128xbf16>, vector<8x128xf32> -> vector<8x128xf32>
    %c0_108 = arith.constant 0 : index
    %157 = arith.index_cast %c7_i32 : i32 to index
    %c0_109 = arith.constant 0 : index
    %c0_110 = arith.constant 0 : index
    %158 = vector.load %arg5[%c0_108, %157, %c0_109, %c0_110] : memref<1x8x1x128xi32, #tpu.memory_space<vmem>>, vector<1x1x1x128xi32>
    %159 = vector.shape_cast %158 : vector<1x1x1x128xi32> to vector<1x128xi32>
    %160 = tpu.iota {dimensions = array<i32: 0>} : vector<27x128xi32>
    %161 = vector.broadcast %159 : vector<1x128xi32> to vector<27x128xi32>
    %162 = arith.cmpi eq, %160, %161 : vector<27x128xi32>
    %163 = arith.extui %162 : vector<27x128xi1> to vector<27x128xi32>
    %164 = arith.sitofp %163 : vector<27x128xi32> to vector<27x128xf32>
    %165 = arith.truncf %164 : vector<27x128xf32> to vector<27x128xbf16>
    %cst_111 = arith.constant dense<0.000000e+00> : vector<8x128xf32>
    %166 = tpu.matmul %1, %165, %cst_111 {dimension_numbers = #tpu.dot_dimension_numbers<[1], [0], [0], [1], [0, 0, 1, 1], [], []>} : vector<8x27xbf16>, vector<27x128xbf16>, vector<8x128xf32> -> vector<8x128xf32>
    %c0_112 = arith.constant 0 : index
    %c0_113 = arith.constant 0 : index
    %c0_114 = arith.constant 0 : index
    %167 = vector.load %arg6[%c0_112, %c0_113, %c0_114] : memref<1x8x128xf32, #tpu.memory_space<vmem>>, vector<1x8x128xf32>
    %168 = vector.shape_cast %167 : vector<1x8x128xf32> to vector<8x128xf32>
    %169 = arith.mulf %166, %156 : vector<8x128xf32>
    %170 = arith.addf %168, %169 : vector<8x128xf32>
    %c0_115 = arith.constant 0 : index
    %c0_116 = arith.constant 0 : index
    %c0_117 = arith.constant 0 : index
    %171 = vector.load %arg6[%c0_115, %c0_116, %c0_117] : memref<1x8x128xf32, #tpu.memory_space<vmem>>, vector<1x8x128xf32>
    %172 = vector.shape_cast %171 : vector<1x8x128xf32> to vector<8x128xf32>
    %173 = vector.shape_cast %170 : vector<8x128xf32> to vector<1x8x128xf32>
    tpu.vector_store %arg6[%c0_115, %c0_116, %c0_117], %173 {strides = array<i32>} : memref<1x8x128xf32, #tpu.memory_space<vmem>>, vector<1x8x128xf32>,
    %c8_i32 = arith.constant 8 : i32
    return
  }
  func.func @transform_0(%arg0: i32, %arg1: i32) -> (i32, i32) {
    %c0_i32 = arith.constant 0 : i32
    %c0_i32_0 = arith.constant 0 : i32
    %c0_i32_1 = arith.constant 0 : i32
    return %c0_i32, %c0_i32_0 : i32, i32
  }
  func.func @transform_1(%arg0: i32, %arg1: i32) -> (i32, i32) {
    %c0_i32 = arith.constant 0 : i32
    %c0_i32_0 = arith.constant 0 : i32
    %c0_i32_1 = arith.constant 0 : i32
    return %c0_i32, %c0_i32_0 : i32, i32
  }
  func.func @transform_2(%arg0: i32, %arg1: i32) -> (i32, i32, i32, i32) {
    %c0_i32 = arith.constant 0 : i32
    %c0_i32_0 = arith.constant 0 : i32
    %c0_i32_1 = arith.constant 0 : i32
    return %arg0, %c0_i32, %c0_i32_0, %arg1 : i32, i32, i32, i32
  }
  func.func @transform_3(%arg0: i32, %arg1: i32) -> (i32, i32, i32, i32) {
    %c0_i32 = arith.constant 0 : i32
    %c0_i32_0 = arith.constant 0 : i32
    %c0_i32_1 = arith.constant 0 : i32
    return %arg0, %c0_i32, %c0_i32_0, %arg1 : i32, i32, i32, i32
  }
  func.func @transform_4(%arg0: i32, %arg1: i32) -> (i32, i32, i32) {
    %c0_i32 = arith.constant 0 : i32
    %c0_i32_0 = arith.constant 0 : i32
    return %arg0, %c0_i32, %arg1 : i32, i32, i32
  }
}

</mosaic_0001>

<bundles_post_ra>
// kernel: tpu_custom_call.1
= control target key start
LH: loop header
LB: loop body
LE: loop exit
PB: predicated region body
PF: predicated region fallthrough
CT: control target
= control target key end

     0   :  { %9 = vsyncpa [#allocation3], 0  ;;  %s2014_s0 = inlined_call_operand.vmem [shape: bf16[8,7], index: 0, kind: input, shape index: {}]   ;;  %s2015_s1 = inlined_call_operand.vmem [shape: bf16[8,27], index: 1, kind: input, shape index: {}]   ;;  %s2016_s2 = inlined_call_operand.vmem [shape: bf16[2,8,7,128], index: 2, kind: input, shape index: {}]   ;;  %s2017_s3 = inlined_call_operand.vmem [shape: s32[2,8,1,128], index: 3, kind: input, shape index: {}]   ;;  %s2018_s4 = inlined_call_operand.hbm [shape: f32[2,8,128], index: 4, kind: output, shape index: {}]  }
   0x1   :  { %11 = vsyncpa [#allocation3 + $0x1], 0  ;;  %s1691_s15 = smov 0   ;;  %s1693_s16 = smov 0  }
   0x2   :  { %s1695_s17 = smov 0   ;;  %s1697_s18 = smov 0  }
   0x3   :  { %s1699_s19 = smov 0   ;;  %s1701_s20 = smov 0  }
   0x4 LB: > { %s1272_s21 = sadd.s32 4294967295, %s1659_s20   ;;  %s1273_s22 = sadd.s32 4294967294, %s1659_s20   ;;  %s1659_s20 = sphi %s1701_s20, %s17_s20   ;;  %s1655_s19 = sphi %s1699_s19, %s2025_s19   ;;  %s1651_s18 = sphi %s1697_s18, %s2024_s18   ;;  %s1647_s17 = sphi %s1695_s17, %s2023_s17   ;;  %s1643_s16 = sphi %s1693_s16, %s2022_s16   ;;  %s1639_s15 = sphi %s1691_s15, %s2021_s15  }
   0x5   : > { %s29_s23 = sadd.s32 1, %s1655_s19  ;;  %s136_s24 = sadd.s32 1, %s1647_s17 }
   0x6   : > { %p31_p0 = scmp.ge.s32.totalorder %s29_s23, 2  ;;  %p146_p1 = scmp.ne.s32.totalorder %s1647_s17, %s1643_s16 }
   0x7   : > { %p147_p2 = scmp.eq.s32.totalorder %s1272_s21, 1  ;;  %p152_p3 = scmp.ne.s32.totalorder %s1643_s16, %s1639_s15 }
   0x8   : > { %s2027_s23 = smov (%p31_p0, %s29_s23), 0  ;;  %p153_p5 = scmp.eq.s32.totalorder %s1273_s22, 1 }
   0x9   : > { %p1731_p4 = por %p147_p2, %p146_p1  ;;  %s131_s26 = ssub.s32 %s1655_s19, %s2027_s23 }
   0xa   : > { %p1276_p6 = scmp.ge.s32.totalorder %s1659_s20, 1  ;;  %p134_p7 = scmp.eq.s32.totalorder %s131_s26, 0 }
   0xb   : > { %p1738_p8 = por %p153_p5, %p152_p3  ;;  %p198_p9 = scmp.lt.s32.totalorder %s1659_s20, 3 }
   0xc   : > { %s1744_s28 = scalar_select %p134_p7, %s1647_s17, %s136_s24  }
   0xd   : > { %p199_p10 = pnand %p1276_p6, %p198_p9 }
   0xe   : > { %p234_p11 = scmp.lt.s32.totalorder (!%p199_p10), %s1651_s18, 1  ;;  %s231_s22 = sand.u32 (!%p199_p10), 1, %s1643_s16  }
   0xf   : > { %202 = sbr.rel (%p199_p10) target bundleno = 307 (0x133), region = 36  ;;  %s1277_s24 = sshll.u32 (!%p199_p10), %s231_s22, 3 }
  0x10   : > { %s1368_s26 = sshll.u32 (!%p199_p10), %s1651_s18, 7  ;;  %s1665_s9 = smov (!%p199_p10), [#allocation2]  }
  0x11   : > { %s1966_s7 = scalar_lea.hbm (!%p199_p10), %s2018_s4, %s1368_s26  ;;  %s1587_s10 = sshll.u32 (!%p199_p10), %s1665_s9, 4  ;;  %s1588_s10 = int_to_ptr.vmem [resolvable:$false] %s1587_s10 }
  0x14   : > { %vm258_vm0 = vcmask 1042432   ;;  %v1661_v0 = vmov 0.0   ;;  %vm259_vm1 = vcmask 1043456   ;;  %v1662_v1 = vmov 65535   ;;  %s235_s29 = scalar_select %p234_p11, %s1651_s18, 1 }
  0x15   : > { %1412 = vmatprep.subr.bf16.mxu0 %v1661_v0  ;;  %v260_v2 = vsel %vm258_vm0, 4294967295, %v1662_v1  ;;  %1418 = vmatprep.subr.bf16.mxu1 %v1661_v0  ;;  %v306_v3 = vlaneseq  ;;  %vm1663_vm2 = vmmov 0   ;;  %vm333_vm3 = vcmask 1044480   ;;  %v1791_v19 = vld [vmem:[%s2014_s0] sm:$0xf]  ;;  %s1169_s18 = scalar_lea.sflag [#allocation3], %s231_s22 }
  0x16   : > { %1414 = vmatprep.mubr.msk.bf16.mxu0 %vm1663_vm2, %v1661_v0  ;;  %1422 = vmatprep.mubr.msk.bf16.mxu1 %vm1663_vm2, %v1661_v0  ;;  %s1371_s30 = sshll.u32 %s235_s29, 5  ;;  %s1280_s5 = sshll.u32 %s235_s29, 3  ;;  %v1756_v5 = vsel %vm259_vm1, %v260_v2, 0  ;;  %vm334_vm4 = vcmask 1045504   ;;  %v335_v8 = vsel %vm333_vm3, 4294967295, %v1662_v1  ;;  %vm254_vm7 = vcmask 56320  }
  0x17   : > { %v1754_v4 = vshrl.u32 %v306_v3, 7  ;;  %s1761_s8 = scalar_lea.vmem %s2016_s2, %s1371_s30  ;;  %s1766_s11 = scalar_lea.vmem %s2017_s3, %s1280_s5  ;;  %v1786_v17 = vsel %vm334_vm4, %v335_v8, 0  ;;  %v1664_v27 = vmov 1.0|1.0   ;;  %v1816_v28 = vld [vmem:[%s2015_s1] sm:$0xf] }
  0x18   : > { %v253_v9 = vld [vmem:[%s1761_s8] sm:$0xf]  ;;  %v1290_v11 = vld [vmem:[%s1761_s8 + $0x4] sm:$0xf]  ;;  %v1301_v26 = vld [vmem:[%s1761_s8 + $0x8] sm:$0xf] }
  0x19   : > { %v1769_v6 = vadd.s32 16, %v1754_v4  ;;  %v1772_v7 = vadd.s32 24, %v1754_v4  ;;  %v1282_v10 = vld [vmem:[%s1766_s11] ss:$0 sm:$0xff]  ;;  %v263_v12 = vand.u32 %v1756_v5, %v253_v9  ;;  %v1781_v13 = vadd.s32 8, %v1754_v4  ;;  %s233_s29 = scalar_lea.vmem [#allocation2], %s1277_s24 }
  0x1a   : > { %v1293_v14 = vld [vmem:[%s1766_s11 + $0x1] ss:$0 sm:$0xff]  ;;  %v387_v20 = vand.u32 %v1290_v11, %v1756_v5  ;;  %vm315_vm10 = vcmp.eq.s32.totalorder %v1754_v4, %v1282_v10  ;;  %v1304_v24 = vld [vmem:[%s1766_s11 + $0x2] ss:$0 sm:$0xff]  ;;  %vm329_vm15 = vcmask 220160   ;;  %v499_v32 = vand.u32 %v1301_v26, %v1756_v5  ;;  %s1183_s30 = sshll.u32 %s233_s29, 4  ;;  %s1968_s30 = int_to_ptr.vmem [resolvable:$true] %s1183_s30 }
  0x1b   : > { %vm317_vm5 = vcmp.eq.s32.totalorder %v1769_v6, %v1282_v10  ;;  %vm318_vm6 = vcmp.eq.s32.totalorder %v1772_v7, %v1282_v10  ;;  %1413 = vmatpush3.bf16.msra.mxu0 %v263_v12  ;;  %vm437_vm8 = vcmp.eq.s32.totalorder %v1769_v6, %v1293_v14  ;;  %vm438_vm9 = vcmp.eq.s32.totalorder %v1772_v7, %v1293_v14  ;;  %v1315_v33 = vld [vmem:[%s1766_s11 + $0x3] ss:$0 sm:$0xff]  ;;  %v1312_v35 = vld [vmem:[%s1761_s8 + $0xc] sm:$0xf]  ;;  %v1326_v40 = vld [vmem:[%s1766_s11 + $0x4] ss:$0 sm:$0xff]  ;;  %p1590_p1 = scmp.lt.s32.totalorder %s1968_s30, %s1588_s10 }
  0x1c   : > { %v1285_v15 = vsel %vm317_vm5, 1.0, %v1661_v0  ;;  %v1286_v16 = vsel %vm318_vm6, 1.0, %v1661_v0  ;;  %1426 = vmatprep.subr.bf16.mxu0 %v1661_v0  ;;  %v1296_v21 = vsel %vm437_vm8, 1.0, %v1661_v0  ;;  %v1297_v22 = vsel %vm438_vm9, 1.0, %v1661_v0  ;;  %v1323_v42 = vld [vmem:[%s1761_s8 + $0x10] sm:$0xf] }
  0x1d   : > { %v328_v18 = vpack.c.bf16 %v1286_v16, %v1285_v15  ;;  %vm316_vm11 = vcmp.eq.s32.totalorder %v1781_v13, %v1282_v10  ;;  %v448_v25 = vpack.c.bf16 %v1297_v22, %v1296_v21  ;;  %vm549_vm13 = vcmp.eq.s32.totalorder %v1769_v6, %v1304_v24  ;;  %v1337_v47 = vld [vmem:[%s1766_s11 + $0x5] ss:$0 sm:$0xff]  ;;  %v1334_v49 = vld [vmem:[%s1761_s8 + $0x14] sm:$0xf]  ;;  %v1348_v54 = vld [vmem:[%s1766_s11 + $0x6] ss:$0 sm:$0xff] }
  0x1e   : > { %1415 = vmatmul.mubr.msk.bf16.vlgmr.msra.gmra.mxu0 %vm254_vm7, %v1791_v19  ;;  %vm1287_vm12 = vmpackc.low %vm316_vm11, %vm315_vm10  ;;  %vm550_vm14 = vcmp.eq.s32.totalorder %v1772_v7, %v1304_v24  ;;  %v1307_v30 = vsel %vm549_vm13, 1.0, %v1661_v0  ;;  %vm435_vm0 = vcmp.eq.s32.totalorder %v1754_v4, %v1293_v14  ;;  %vm436_vm1 = vcmp.eq.s32.totalorder %v1781_v13, %v1293_v14  ;;  %v1345_v56 = vld [vmem:[%s1761_s8 + $0x18] sm:$0xf]  ;;  %v1359_v61 = vld [vmem:[%s1766_s11 + $0x7] ss:$0 sm:$0xff]  ;;  %s1589_s11 = scalar_lea.vmem %s1588_s10, 256 }
  0x1f   : > { %v338_v23 = vand.u32 %v1786_v17, %v328_v18  ;;  %1427 = vmatpush3.bf16.msra.mxu0 %v387_v20  ;;  %1428 = vmatprep.mubr.msk.bf16.mxu0 %vm1663_vm2, %v1661_v0  ;;  %v450_v29 = vand.u32 %v448_v25, %v1786_v17  ;;  %v1308_v31 = vsel %vm550_vm14, 1.0, %v1661_v0  ;;  %vm1298_vm3 = vmpackc.low %vm436_vm1, %vm435_vm0  ;;  %vm661_vm4 = vcmp.eq.s32.totalorder %v1769_v6, %v1315_v33  ;;  %v1356_v63 = vld [vmem:[%s1761_s8 + $0x1c] sm:$0xf]  ;;  %s1583_s8 = scalar_lea.vmem %s1968_s30, 128 }
  0x20   : > { %1440 = vmatprep.subr.bf16.mxu0 %v1661_v0  ;;  %v560_v34 = vpack.c.bf16 %v1308_v31, %v1307_v30  ;;  %vm662_vm5 = vcmp.eq.s32.totalorder %v1772_v7, %v1315_v33  ;;  %v1318_v37 = vsel %vm661_vm4, 1.0, %v1661_v0  ;;  %v611_v39 = vand.u32 %v1312_v35, %v1756_v5  ;;  %p1584_p12 = scmp.ne.s32.totalorder %s1968_s30, %s1583_s8  ;;  %p1591_p2 = scmp.lt.s32.totalorder %s1589_s11, %s1583_s8 }
  0x21   : > { %1419 = vmatpush3.bf16.msra.mxu1 %v338_v23  ;;  %v1319_v38 = vsel %vm662_vm5, 1.0, %v1661_v0  ;;  %vm547_vm6 = vcmp.eq.s32.totalorder %v1754_v4, %v1304_v24  ;;  %vm548_vm8 = vcmp.eq.s32.totalorder %v1781_v13, %v1304_v24  ;;  %vm773_vm10 = vcmp.eq.s32.totalorder %v1769_v6, %v1326_v40 }
  0x22   : > { %1420 = vmatprep.subr.bf16.mxu1 %v1661_v0  ;;  %v562_v36 = vand.u32 %v560_v34, %v1786_v17  ;;  %v672_v41 = vpack.c.bf16 %v1319_v38, %v1318_v37  ;;  %vm1309_vm9 = vmpackc.low %vm548_vm8, %vm547_vm6  ;;  %vm774_vm11 = vcmp.eq.s32.totalorder %v1772_v7, %v1326_v40  ;;  %v1329_v44 = vsel %vm773_vm10, 1.0, %v1661_v0  ;;  %p1585_p13 = pnand %p1584_p12, %p1731_p4  ;;  %p1592_p3 = por %p1591_p2, %p1590_p1 }
  0x23   : > { %v1330_v45 = vsel %vm774_vm11, 1.0, %v1661_v0  ;;  %v723_v46 = vand.u32 %v1323_v42, %v1756_v5  ;;  %vm660_vm13 = vcmp.eq.s32.totalorder %v1781_v13, %v1315_v33  ;;  %vm885_vm0 = vcmp.eq.s32.totalorder %v1769_v6, %v1337_v47 }
  0x24   : > { %v674_v43 = vand.u32 %v672_v41, %v1786_v17  ;;  %v784_v48 = vpack.c.bf16 %v1330_v45, %v1329_v44  ;;  %vm886_vm1 = vcmp.eq.s32.totalorder %v1772_v7, %v1337_v47  ;;  %v1340_v51 = vsel %vm885_vm0, 1.0, %v1661_v0  ;;  %p1586_p0 = pneg %p1585_p13 }
  0x25   : > { %1421 = vmatpush3.bf16.msk.msra.mxu1 %vm1287_vm12, %v1664_v27  ;;  %vm659_vm12 = vcmp.eq.s32.totalorder %v1754_v4, %v1315_v33  ;;  %v1341_v52 = vsel %vm886_vm1, 1.0, %v1661_v0  ;;  %v835_v53 = vand.u32 %v1334_v49, %v1756_v5  ;;  %vm772_vm4 = vcmp.eq.s32.totalorder %v1781_v13, %v1326_v40 }
  0x26   : > { %1432 = vmatprep.subr.bf16.mxu1 %v1661_v0  ;;  %1429 = vmatmul.mubr.msk.bf16.vlgmr.msra.gmra.mxu0 %vm254_vm7, %v1791_v19  ;;  %vm1320_vm14 = vmpackc.low %vm660_vm13, %vm659_vm12  ;;  %v786_v50 = vand.u32 %v784_v48, %v1786_v17  ;;  %v896_v55 = vpack.c.bf16 %v1341_v52, %v1340_v51  ;;  %vm997_vm6 = vcmp.eq.s32.totalorder %v1769_v6, %v1348_v54  ;;  %p1593_p5 = pnand %p1592_p3, %p1586_p0 }
  0x27   : > { %1441 = vmatpush3.bf16.msra.mxu0 %v499_v32  ;;  %1442 = vmatprep.mubr.msk.bf16.mxu0 %vm1663_vm2, %v1661_v0  ;;  %vm998_vm8 = vcmp.eq.s32.totalorder %v1772_v7, %v1348_v54  ;;  %v1351_v58 = vsel %vm997_vm6, 1.0, %v1661_v0  ;;  %v947_v60 = vand.u32 %v1345_v56, %v1756_v5  ;;  %vm884_vm10 = vcmp.eq.s32.totalorder %v1781_v13, %v1337_v47 }
  0x28   : > { %1423 = vmatmul.mubr.msk.bf16.vlgmr.msra.gmra.mxu1 %vm329_vm15, %v1816_v28  ;;  %1454 = vmatprep.subr.bf16.mxu0 %v1661_v0  ;;  %v898_v57 = vand.u32 %v896_v55, %v1786_v17  ;;  %v1352_v59 = vsel %vm998_vm8, 1.0, %v1661_v0  ;;  %vm1109_vm12 = vcmp.eq.s32.totalorder %v1769_v6, %v1359_v61  ;;  %vm1110_vm13 = vcmp.eq.s32.totalorder %v1772_v7, %v1359_v61 }
  0x29   : > { %1433 = vmatpush3.bf16.msra.mxu1 %v450_v29  ;;  %1436 = vmatprep.mubr.msk.bf16.mxu1 %vm1663_vm2, %v1661_v0  ;;  %v1008_v62 = vpack.c.bf16 %v1352_v59, %v1351_v58  ;;  %v1362_v2 = vsel %vm1109_vm12, 1.0, %v1661_v0  ;;  %v1363_v3 = vsel %vm1110_vm13, 1.0, %v1661_v0  ;;  %v1059_v8 = vand.u32 %v1356_v63, %v1756_v5 }
  0x2a   : > { %1434 = vmatprep.subr.bf16.mxu1 %v1661_v0  ;;  %vm996_vm0 = vcmp.eq.s32.totalorder %v1781_v13, %v1348_v54  ;;  %v1120_v6 = vpack.c.bf16 %v1363_v3, %v1362_v2 }
  0x2b   : > { %v1010_v1 = vand.u32 %v1008_v62, %v1786_v17 }
  0x2c   : > { %v1122_v5 = vand.u32 %v1120_v6, %v1786_v17 }
  0x2d   : > { %1435 = vmatpush3.bf16.msk.msra.mxu1 %vm1298_vm3, %v1664_v27  ;;  %vm771_vm3 = vcmp.eq.s32.totalorder %v1754_v4, %v1326_v40 }
  0x2e   : > { %1446 = vmatprep.subr.bf16.mxu1 %v1661_v0  ;;  %1443 = vmatmul.mubr.msk.bf16.vlgmr.msra.gmra.mxu0 %vm254_vm7, %v1791_v19  ;;  %vm1331_vm5 = vmpackc.low %vm772_vm4, %vm771_vm3  ;;  %vm1107_vm3 = vcmp.eq.s32.totalorder %v1754_v4, %v1359_v61  ;;  %vm1108_vm4 = vcmp.eq.s32.totalorder %v1781_v13, %v1359_v61 }
  0x2f   : > { %1455 = vmatpush3.bf16.msra.mxu0 %v611_v39  ;;  %1456 = vmatprep.mubr.msk.bf16.mxu0 %vm1663_vm2, %v1661_v0 }
  0x30   : > { %1437 = vmatmul.mubr.msk.bf16.vlgmr.msra.gmra.mxu1 %vm329_vm15, %v1816_v28  ;;  %1468 = vmatprep.subr.bf16.mxu0 %v1661_v0 }
  0x31   : > { %1447 = vmatpush3.bf16.msra.mxu1 %v562_v36  ;;  %1450 = vmatprep.mubr.msk.bf16.mxu1 %vm1663_vm2, %v1661_v0 }
  0x32   : > { %1448 = vmatprep.subr.bf16.mxu1 %v1661_v0 }
  0x35   : > { %1449 = vmatpush3.bf16.msk.msra.mxu1 %vm1309_vm9, %v1664_v27  ;;  %vm883_vm9 = vcmp.eq.s32.totalorder %v1754_v4, %v1337_v47 }
  0x36   : > { %1460 = vmatprep.subr.bf16.mxu1 %v1661_v0  ;;  %1457 = vmatmul.mubr.msk.bf16.vlgmr.msra.gmra.mxu0 %vm254_vm7, %v1791_v19  ;;  %vm1342_vm11 = vmpackc.low %vm884_vm10, %vm883_vm9 }
  0x37   : > { %1469 = vmatpush3.bf16.msra.mxu0 %v723_v46  ;;  %1470 = vmatprep.mubr.msk.bf16.mxu0 %vm1663_vm2, %v1661_v0 }
  0x38   : > { %1451 = vmatmul.mubr.msk.bf16.vlgmr.msra.gmra.mxu1 %vm329_vm15, %v1816_v28  ;;  %1482 = vmatprep.subr.bf16.mxu0 %v1661_v0 }
  0x39   : > { %1461 = vmatpush3.bf16.msra.mxu1 %v674_v43  ;;  %1464 = vmatprep.mubr.msk.bf16.mxu1 %vm1663_vm2, %v1661_v0 }
  0x3a   : > { %1462 = vmatprep.subr.bf16.mxu1 %v1661_v0 }
  0x3d   : > { %1463 = vmatpush3.bf16.msk.msra.mxu1 %vm1320_vm14, %v1664_v27  ;;  %vm995_vm14 = vcmp.eq.s32.totalorder %v1754_v4, %v1348_v54 }
  0x3e   : > { %1474 = vmatprep.subr.bf16.mxu1 %v1661_v0  ;;  %1471 = vmatmul.mubr.msk.bf16.vlgmr.msra.gmra.mxu0 %vm254_vm7, %v1791_v19  ;;  %vm1353_vm1 = vmpackc.low %vm996_vm0, %vm995_vm14 }
  0x3f   : > { %1483 = vmatpush3.bf16.msra.mxu0 %v835_v53  ;;  %1484 = vmatprep.mubr.msk.bf16.mxu0 %vm1663_vm2, %v1661_v0 }
  0x40   : > { %1465 = vmatmul.mubr.msk.bf16.vlgmr.msra.gmra.mxu1 %vm329_vm15, %v1816_v28  ;;  %1496 = vmatprep.subr.bf16.mxu0 %v1661_v0 }
  0x41   : > { %1475 = vmatpush3.bf16.msra.mxu1 %v786_v50  ;;  %1478 = vmatprep.mubr.msk.bf16.mxu1 %vm1663_vm2, %v1661_v0 }
  0x42   : > { %1476 = vmatprep.subr.bf16.mxu1 %v1661_v0 }
  0x45   : > { %1477 = vmatpush3.bf16.msk.msra.mxu1 %vm1331_vm5, %v1664_v27  ;;  %vm1364_vm5 = vmpackc.low %vm1108_vm4, %vm1107_vm3 }
  0x46   : > { %1488 = vmatprep.subr.bf16.mxu1 %v1661_v0  ;;  %1485 = vmatmul.mubr.msk.bf16.vlgmr.msra.gmra.mxu0 %vm254_vm7, %v1791_v19 }
  0x47   : > { %1497 = vmatpush3.bf16.msra.mxu0 %v947_v60  ;;  %1498 = vmatprep.mubr.msk.bf16.mxu0 %vm1663_vm2, %v1661_v0 }
  0x48   : > { %1479 = vmatmul.mubr.msk.bf16.vlgmr.msra.gmra.mxu1 %vm329_vm15, %v1816_v28  ;;  %1510 = vmatprep.subr.bf16.mxu0 %v1661_v0 }
  0x49   : > { %1489 = vmatpush3.bf16.msra.mxu1 %v898_v57  ;;  %1492 = vmatprep.mubr.msk.bf16.mxu1 %vm1663_vm2, %v1661_v0 }
  0x4a   : > { %1490 = vmatprep.subr.bf16.mxu1 %v1661_v0 }
  0x4d   : > { %1491 = vmatpush3.bf16.msk.msra.mxu1 %vm1342_vm11, %v1664_v27 }
  0x4e   : > { %1502 = vmatprep.subr.bf16.mxu1 %v1661_v0  ;;  %1499 = vmatmul.mubr.msk.bf16.vlgmr.msra.gmra.mxu0 %vm254_vm7, %v1791_v19 }
  0x4f   : > { %1511 = vmatpush3.bf16.msra.mxu0 %v1059_v8  ;;  %1512 = vmatprep.mubr.msk.bf16.mxu0 %vm1663_vm2, %v1661_v0 }
  0x50   : > { %1493 = vmatmul.mubr.msk.bf16.vlgmr.msra.gmra.mxu1 %vm329_vm15, %v1816_v28 }
  0x51   : > { %1503 = vmatpush3.bf16.msra.mxu1 %v1010_v1  ;;  %1506 = vmatprep.mubr.msk.bf16.mxu1 %vm1663_vm2, %v1661_v0 }
  0x52   : > { %1504 = vmatprep.subr.bf16.mxu1 %v1661_v0 }
  0x55   : > { %1505 = vmatpush3.bf16.msk.msra.mxu1 %vm1353_vm1, %v1664_v27 }
  0x56   : > { %1516 = vmatprep.subr.bf16.mxu1 %v1661_v0  ;;  %1513 = vmatmul.mubr.msk.bf16.vlgmr.msra.gmra.mxu0 %vm254_vm7, %v1791_v19 }
  0x58   : > { %1507 = vmatmul.mubr.msk.bf16.vlgmr.msra.gmra.mxu1 %vm329_vm15, %v1816_v28 }
  0x59   : > { %1517 = vmatpush3.bf16.msra.mxu1 %v1122_v5  ;;  %1520 = vmatprep.mubr.msk.bf16.mxu1 %vm1663_vm2, %v1661_v0 }
  0x5a   : > { %1518 = vmatprep.subr.bf16.mxu1 %v1661_v0 }
  0x5d   : > { %1519 = vmatpush3.bf16.msk.msra.mxu1 %vm1364_vm5, %v1664_v27 }
  0x60   : > { %1521 = vmatmul.mubr.msk.bf16.vlgmr.msra.gmra.mxu1 %vm329_vm15, %v1816_v28 }
  0xde   : > { %v299_v4 = vpop.f32.mrf.mxu0 }
  0xe0   : > { %v1416_v7 = vpop.f32.mrf.mxu0 }
  0xe2   : > { %v302_v9 = vpop.f32.mrf.mxu0 }
  0xe4   : > { %v1417_v10 = vpop.f32.mrf.mxu0 }
  0xe6   : > { %v423_v12 = vpop.f32.mrf.mxu0 }
  0xe8   : > { %v374_v11 = vpop.f32.mrf.mxu1  ;;  %v1430_v14 = vpop.f32.mrf.mxu0 }
  0xe9   : > { %v381_v52 = vmul.f32 %v374_v11, %v299_v4 }
  0xea   : > { %v1424_v13 = vpop.f32.mrf.mxu1  ;;  %v426_v16 = vpop.f32.mrf.mxu0 }
  0xec   : > { %v377_v15 = vpop.f32.mrf.mxu1  ;;  %v1431_v18 = vpop.f32.mrf.mxu0 }
  0xee   : > { %v1425_v17 = vpop.f32.mrf.mxu1  ;;  %v535_v0 = vpop.f32.mrf.mxu0 }
  0xf0   : > { %v486_v19 = vpop.f32.mrf.mxu1  ;;  %v1444_v21 = vpop.f32.mrf.mxu0 }
  0xf1   : > { %v493_v55 = vmul.f32 %v486_v19, %v423_v12 }
  0xf2   : > { %v1438_v20 = vpop.f32.mrf.mxu1  ;;  %v538_v23 = vpop.f32.mrf.mxu0 }
  0xf3   : > { %v494_v61 = vadd.f32 %v493_v55, %v381_v52 }
  0xf4   : > { %v489_v22 = vpop.f32.mrf.mxu1  ;;  %v1445_v25 = vpop.f32.mrf.mxu0 }
  0xf6   : > { %v1439_v24 = vpop.f32.mrf.mxu1  ;;  %v647_v27 = vpop.f32.mrf.mxu0 }
  0xf8   : > { %v598_v26 = vpop.f32.mrf.mxu1  ;;  %v1458_v29 = vpop.f32.mrf.mxu0 }
  0xf9   : > { %v605_v58 = vmul.f32 %v598_v26, %v535_v0 }
  0xfa   : > { %v1452_v28 = vpop.f32.mrf.mxu1  ;;  %v650_v31 = vpop.f32.mrf.mxu0 }
  0xfb   : > { %v606_v2 = vadd.f32 %v605_v58, %v494_v61 }
  0xfc   : > { %v601_v30 = vpop.f32.mrf.mxu1  ;;  %v1459_v33 = vpop.f32.mrf.mxu0 }
  0xfe   : > { %v1453_v32 = vpop.f32.mrf.mxu1  ;;  %v759_v35 = vpop.f32.mrf.mxu0 }
 0x100   : > { %v710_v34 = vpop.f32.mrf.mxu1  ;;  %v1472_v37 = vpop.f32.mrf.mxu0 }
 0x101   : > { %v717_v62 = vmul.f32 %v710_v34, %v647_v27 }
 0x102   : > { %v1466_v36 = vpop.f32.mrf.mxu1  ;;  %v762_v39 = vpop.f32.mrf.mxu0 }
 0x103   : > { %v718_v5 = vadd.f32 %v717_v62, %v606_v2 }
 0x104   : > { %v713_v38 = vpop.f32.mrf.mxu1  ;;  %v1473_v41 = vpop.f32.mrf.mxu0 }
 0x106   : > { %v1467_v40 = vpop.f32.mrf.mxu1  ;;  %v871_v43 = vpop.f32.mrf.mxu0 }
 0x108   : > { %v822_v42 = vpop.f32.mrf.mxu1  ;;  %v1486_v45 = vpop.f32.mrf.mxu0 }
 0x109   : > { %v829_v3 = vmul.f32 %v822_v42, %v759_v35 }
 0x10a   : > { %v1480_v44 = vpop.f32.mrf.mxu1  ;;  %v874_v47 = vpop.f32.mrf.mxu0 }
 0x10b   : > { %v830_v10 = vadd.f32 %v829_v3, %v718_v5 }
 0x10c   : > { %v825_v46 = vpop.f32.mrf.mxu1  ;;  %v1487_v49 = vpop.f32.mrf.mxu0 }
 0x10e   : > { %v1481_v48 = vpop.f32.mrf.mxu1  ;;  %v983_v51 = vpop.f32.mrf.mxu0 }
 0x110   : > { %v934_v50 = vpop.f32.mrf.mxu1  ;;  %v1500_v54 = vpop.f32.mrf.mxu0 }
 0x111   : > { %v941_v4 = vmul.f32 %v934_v50, %v871_v43 }
 0x112   : > { %v1494_v53 = vpop.f32.mrf.mxu1  ;;  %v986_v57 = vpop.f32.mrf.mxu0 }
 0x113   : > { %v942_v14 = vadd.f32 %v941_v4, %v830_v10 }
 0x114   : > { %v937_v56 = vpop.f32.mrf.mxu1  ;;  %v1501_v60 = vpop.f32.mrf.mxu0 }
 0x116   : > { %v1495_v59 = vpop.f32.mrf.mxu1  ;;  %v1095_v1 = vpop.f32.mrf.mxu0 }
 0x118   : > { %v1046_v63 = vpop.f32.mrf.mxu1  ;;  %v1514_v6 = vpop.f32.mrf.mxu0 }
 0x119   : > { %v1053_v11 = vmul.f32 %v1046_v63, %v983_v51 }
 0x11a   : > { %v1508_v8 = vpop.f32.mrf.mxu1  ;;  %v1098_v9 = vpop.f32.mrf.mxu0 }
 0x11b   : > { %v1054_v16 = vadd.f32 %v1053_v11, %v942_v14 }
 0x11c   : > { %v1049_v7 = vpop.f32.mrf.mxu1  ;;  %v1515_v13 = vpop.f32.mrf.mxu0 }
 0x11e   : > { %v1509_v12 = vpop.f32.mrf.mxu1 }
 0x120   : > { %v1158_v15 = vpop.f32.mrf.mxu1 }
 0x121   : > { %v1165_v17 = vmul.f32 %v1158_v15, %v1095_v1 }
 0x122   : > { %v1522_v18 = vpop.f32.mrf.mxu1 }
 0x123   : > { %v1166_v19 = vadd.f32 %v1165_v17, %v1054_v16 }
 0x124   : > { %v1161_v0 = vpop.f32.mrf.mxu1 }
 0x125   : > { %1167 = vst [vmem:[%s233_s29] sm:$0xff] %v1166_v19 }
 0x126   : > { %v1523_v20 = vpop.f32.mrf.mxu1 }
 0x127   : > { %1596 = shalt.err (!%p1593_p5)
}
 0x128   : > { %s1597_s12 = scalar_lea.hbm %s1966_s7, 128  ;;  %s1601_s21 = scalar_lea.hbm %s2018_s4, 256 }
 0x129   : > { %p1598_p6 = scmp.ne.s32.totalorder %s1966_s7, %s1597_s12  ;;  %p1602_p10 = scmp.lt.s32.totalorder %s1966_s7, %s2018_s4 }
 0x12a   : > { %p1603_p11 = scmp.lt.s32.totalorder %s1601_s21, %s1597_s12 }
 0x12b   : > { %p1599_p7 = pnand %p1598_p6, %p1731_p4 }
 0x12c   : > { %p1604_p12 = por %p1603_p11, %p1602_p10 }
 0x12d   : > { %p1600_p9 = pneg %p1599_p7 }
 0x12f   : > { %p1605_p13 = pnand %p1604_p12, %p1600_p9 }
 0x131   : > { %1608 = shalt.err (!%p1605_p13)
}
 0x132   : > { %1524 = dma.vmem_to_hbm [thread:$0]  (%p1731_p4), %s1968_s30, 128, %s1966_s7, %s1169_s18  }
 0x133 PF: > { %p1530_p0 = scmp.ge.s32.totalorder %s1659_s20, 2  ;;  %s1195_s26 = sand.u32 1, %s1639_s15  }
 0x134   : > { %s1196_s29 = scalar_lea.sflag [#allocation3], %s1195_s26 }
 0x135   : > { %p1527_p1 = pnand %p1530_p0, %p1738_p8 }
 0x137   : > { %p1528_p2 = pneg %p1527_p1 }
 0x139   : > { %1634 = dma.done.wait (%p1528_p2), %s1196_s29, 128  }
 0x13a   : > { %1636 = vsyncadd (%p1528_p2), %s1196_s29, 4294967168  ;;  %s17_s20 = sadd.s32 1, %s1659_s20   ;;  %s2021_s15 = smov %s1643_s16 }
 0x13b   : > { %p14_p3 = scmp.ge.s32.totalorder %s17_s20, 4   ;;  %s2022_s16 = smov %s1647_s17 }
 0x13c   : > { %s2023_s17 = smov %s1744_s28  ;;  %s2024_s18 = smov %s1655_s19 }
 0x13d   : > { %s2025_s19 = smov %s2027_s23  ;;  %16 = sbr.rel (!%p14_p3) target bundleno = 4 (0x4), region = 88 }
 0x142   :  { %1201 = vsyncpa [#allocation3], 1 }
 0x143   :  { %1203 = vsyncpa [#allocation3 + $0x1], 1 }

</bundles_post_ra>
